<compile_context>
chip_gen: v7x
topology: tpu7x:2x2x1
jax: 0.10.0
libtpu: 0.0.40
codegen_flags: <defaults>
</compile_context>

<pallas_src>
import functools

import jax
import jax.numpy as jnp
from jax import lax
from jax.experimental import pallas as pl
from jax.experimental.pallas import tpu as pltpu


def _round_up(x, m):
    return (x + m - 1) // m * m


_FUSED_VMEM_BUDGET = 44 * 1024 * 1024   # pick fused path only if it fits here
_VMEM_CAP = 48 * 1024 * 1024            # safe on every generation (v7x: 64 MiB)


# ---------------------------------------------------------------------------
# Fused path: all propagation layers in a single pallas_call.
# ---------------------------------------------------------------------------
def _fused_layers_kernel(num_layers, inv_scale,
                         dinv_ref, a_ref, pooled_ref, out_ref,
                         cur_ref, acc_ref):
    """Per feature-column tile:
         cur_0 = pooled;  cur_{l+1} = diag(D) * (A @ cur_l)
         out   = mean(cur_0 ... cur_L)
       A stays resident in VMEM; cur / running sum live in f32 scratch."""
    cur_ref[...] = pooled_ref[...]
    acc_ref[...] = pooled_ref[...]

    def body(_, carry):
        new = jnp.dot(a_ref[...], cur_ref[...].astype(jnp.bfloat16),
                      preferred_element_type=jnp.float32)
        new = new * dinv_ref[...]          # row scale == D @ (A @ cur), D diagonal
        cur_ref[...] = new                 # kept in f32 (no bf16 round-trip drift)
        acc_ref[...] = acc_ref[...] + new
        return carry

    lax.fori_loop(0, num_layers, body, 0, unroll=True)
    out_ref[...] = acc_ref[...] * jnp.float32(inv_scale)


def _fused_footprint(Sp, tn):
    # A (bf16, double-buffered) + dinv + pooled-in + out (double-buffered)
    # + two f32 scratch slabs (cur, running sum).
    return (2 * Sp * Sp * 2 + 2 * Sp * 4
            + 2 * Sp * tn * 4        # pooled in
            + 2 * Sp * tn * 4        # out
            + 2 * Sp * tn * 4)       # scratch (cur + acc)


def _make_fused_call(num_layers, Sp, Hp, tn, vmem_limit):
    kernel = functools.partial(_fused_layers_kernel, num_layers,
                               1.0 / (num_layers + 1))
    return pl.pallas_call(
        kernel,
        out_shape=jax.ShapeDtypeStruct((Sp, Hp), jnp.float32),
        grid_spec=pltpu.PrefetchScalarGridSpec(
            num_scalar_prefetch=0,
            grid=(Hp // tn,),
            in_specs=[
                pl.BlockSpec((Sp, 1), lambda j: (0, 0)),    # diag(D), f32
                pl.BlockSpec((Sp, Sp), lambda j: (0, 0)),   # A bf16 (fetched once)
                pl.BlockSpec((Sp, tn), lambda j: (0, j)),   # pooled, f32
            ],
            out_specs=pl.BlockSpec((Sp, tn), lambda j: (0, j)),
            scratch_shapes=[pltpu.VMEM((Sp, tn), jnp.float32),   # cur
                            pltpu.VMEM((Sp, tn), jnp.float32)],  # running sum
        ),
        compiler_params=pltpu.CompilerParams(
            dimension_semantics=("parallel",),
            vmem_limit_bytes=vmem_limit),
    )


# ---------------------------------------------------------------------------
# Tiled fallback: one pallas_call per layer (A streamed once per layer).
# ---------------------------------------------------------------------------
def _tiled_layer_kernel(dinv_ref, a_ref, cur_ref, acc_in_ref,
                        new_cur_ref, acc_out_ref, acc_scratch):
    """new = diag(D) * (A @ cur);  acc_out = acc_in + new  (K-reduction grid)."""
    k = pl.program_id(2)

    @pl.when(k == 0)
    def _():
        acc_scratch[...] = jnp.zeros_like(acc_scratch)

    acc_scratch[...] += jnp.dot(a_ref[...], cur_ref[...],
                                preferred_element_type=jnp.float32)

    @pl.when(k == pl.num_programs(2) - 1)
    def _():
        new = acc_scratch[...] * dinv_ref[...]
        new_cur_ref[...] = new.astype(jnp.bfloat16)
        acc_out_ref[...] = acc_in_ref[...] + new


def _make_tiled_call(Sp, Hp, tm, tn, tk, vmem_limit):
    grid = (Sp // tm, Hp // tn, Sp // tk)
    return pl.pallas_call(
        _tiled_layer_kernel,
        out_shape=(jax.ShapeDtypeStruct((Sp, Hp), jnp.bfloat16),
                   jax.ShapeDtypeStruct((Sp, Hp), jnp.float32)),
        grid_spec=pltpu.PrefetchScalarGridSpec(
            num_scalar_prefetch=0,
            grid=grid,
            in_specs=[
                pl.BlockSpec((tm, 1), lambda i, j, k: (i, 0)),    # diag(D)
                pl.BlockSpec((tm, tk), lambda i, j, k: (i, k)),   # A (bf16)
                pl.BlockSpec((tk, tn), lambda i, j, k: (k, j)),   # cur (bf16)
                pl.BlockSpec((tm, tn), lambda i, j, k: (i, j)),   # acc_in (f32)
            ],
            out_specs=[
                pl.BlockSpec((tm, tn), lambda i, j, k: (i, j)),   # new cur (bf16)
                pl.BlockSpec((tm, tn), lambda i, j, k: (i, j)),   # acc_out (f32)
            ],
            scratch_shapes=[pltpu.VMEM((tm, tn), jnp.float32)],
        ),
        # Alias acc_in -> acc_out only (same (i,j) block read-then-written).
        # cur -> new_cur must NOT be aliased: (k,j) cur blocks are still read
        # as matmul RHS after earlier (i,j) outputs have been written back.
        input_output_aliases={3: 1},
        compiler_params=pltpu.CompilerParams(
            dimension_semantics=("parallel", "parallel", "arbitrary"),
            vmem_limit_bytes=vmem_limit),
    )


# ---------------------------------------------------------------------------
# Wrapper (forward pass of LineGraphConv).
# ---------------------------------------------------------------------------
def line_graph_conv(D, A, items_embedding, padded_session_info, sessions_len,
                    line_conv_num_layers, force_tiled=False):
    """JAX/Pallas equivalent of LineGraphConv(line_conv_num_layers).forward."""
    S = padded_session_info.shape[0]
    H = items_embedding.shape[1]

    # ---- glue: fused masked session pooling (no zero-row concat copy) ------
    # TODO(synk): for very large S*L*H this gather/sum should become a
    # scalar-prefetch (PrefetchScalarGridSpec) gather+masked-sum Pallas kernel
    # to avoid materializing the (S, L, H) intermediate in HBM.
    ids = padded_session_info.astype(jnp.int32)                    # (S, L), 0 = pad
    mask = ids > 0
    emb = items_embedding.astype(jnp.float32)
    gathered = jnp.take(emb, jnp.where(mask, ids - 1, 0), axis=0)  # (S, L, H)
    # Parity with the PyTorch divide (inf for zero-length sessions).
    inv_len = 1.0 / sessions_len.astype(jnp.float32)
    pooled = jnp.einsum('slh,sl->sh', gathered, mask.astype(jnp.float32))
    pooled = pooled * inv_len[:, None]                             # (S, H) f32

    # D is a degree matrix (diagonal): apply its diagonal as a row scale.
    # TODO(synk): a general dense (non-diagonal) D would need an explicit
    # (S,S)@(S,S) matmul; the module's contract (degree matrix) makes D diagonal.
    d_diag = jnp.diagonal(D.astype(jnp.float32))                   # (S,)

    Hp = _round_up(max(H, 128), 128)                               # lane-dense H

    # ---- path selection: fused (A resident) vs tiled per-layer --------------
    Sp_fused = _round_up(S, 8)
    use_fused = (not force_tiled) and (
        _fused_footprint(Sp_fused, 128) <= _FUSED_VMEM_BUDGET)

    if use_fused:
        Sp = Sp_fused
        # Prefer >=2 feature-column tiles so v7x can shard the "parallel" axis
        # across both TensorCores; with Hp == 128 the grid is a single program
        # (cannot split rows: each layer needs the full previous-layer cur).
        if Hp % 256 == 0 and _fused_footprint(Sp, Hp // 2) <= _FUSED_VMEM_BUDGET:
            tn = Hp // 2
        elif _fused_footprint(Sp, Hp) <= _FUSED_VMEM_BUDGET:
            tn = Hp
        else:
            tn = 128

        # TODO(synk): A could be stored int8 (binary adjacency) and cast to
        # bf16 in-kernel to halve the one-time A DMA; kept bf16 for generality.
        a_p = jnp.pad(A.astype(jnp.float32),
                      ((0, Sp - S), (0, Sp - S))).astype(jnp.bfloat16)
        d_p = jnp.pad(d_diag, (0, Sp - S)).reshape(Sp, 1)
        pooled_p = jnp.pad(pooled, ((0, Sp - S), (0, Hp - H)))

        vmem_limit = min(max(_fused_footprint(Sp, tn) + (2 << 20), 8 << 20),
                         _VMEM_CAP)
        out = _make_fused_call(line_conv_num_layers, Sp, Hp, tn, vmem_limit)(
            d_p, a_p, pooled_p)
        return out[:S, :H]

    # ---- tiled fallback (A does not fit in VMEM) ----------------------------
    if S > 512:
        tm = tk = 512            # big tiles: amortize per-grid-step overhead
    else:
        tm = tk = _round_up(S, 8)
    Sp = _round_up(S, tm)
    tn = Hp                      # full feature dim: A tile read once per (i,k)

    a_p = jnp.pad(A.astype(jnp.float32),
                  ((0, Sp - S), (0, Sp - S))).astype(jnp.bfloat16)
    d_p = jnp.pad(d_diag, (0, Sp - S)).reshape(Sp, 1)
    pooled_p = jnp.pad(pooled, ((0, Sp - S), (0, Hp - H)))

    footprint = (2 * (tm * tk * 2 + tk * tn * 2 + tm * tn * 4 + tm * 4)
                 + 2 * (tm * tn * 2 + tm * tn * 4)
                 + tm * tn * 4)
    vmem_limit = min(max(footprint + (2 << 20), 8 << 20), _VMEM_CAP)

    prop = _make_tiled_call(Sp, Hp, tm, tn, tk, vmem_limit)

    acc = pooled_p                               # f32 running sum over layers
    cur = pooled_p.astype(jnp.bfloat16)          # bf16 MXU RHS
    # TODO(synk): for very deep stacks keep cur in f32 HBM (cur traffic is
    # small vs A) to avoid compounding bf16 re-quantization between layers.
    for _ in range(line_conv_num_layers):        # static trip count
        cur, acc = prop(d_p, a_p, cur, acc)

    out = acc * jnp.float32(1.0 / (line_conv_num_layers + 1))
    return out[:S, :H]


# ---------------------------------------------------------------------------
# Pure-JAX f32 reference mirroring the PyTorch module exactly.
# ---------------------------------------------------------------------------
def _reference_exact(D, A, items_embedding, padded_session_info, sessions_len,
                     num_layers):
    DA = D.astype(jnp.float32) @ A.astype(jnp.float32)
    H = items_embedding.shape[1]
    emb = jnp.concatenate(
        [jnp.zeros((1, H), jnp.float32), items_embedding.astype(jnp.float32)], 0)
    g = jnp.take(emb, padded_session_info.astype(jnp.int32), axis=0)
    pooled = jnp.sum(g, axis=1) / sessions_len.astype(jnp.float32).reshape(-1, 1)
    convs = [pooled]
    for _ in range(num_layers):
        convs.append(DA @ convs[-1])
    return jnp.mean(jnp.stack(convs), axis=0)


if __name__ == "__main__":
    key = jax.random.PRNGKey(0)
    k1, k2, k3, k4 = jax.random.split(key, 4)

    S = 8            # number of sessions (nodes of the line graph)
    L = 6            # padded session length
    N_ITEMS = 20     # number of items
    H = 32           # embedding dim
    NUM_LAYERS = 2   # line_conv_num_layers

    # adjacency + (inverse) degree matrix
    A = (jax.random.uniform(k1, (S, S)) > 0.6).astype(jnp.float32)
    deg = jnp.maximum(jnp.sum(A, axis=1), 1.0)
    D = jnp.diag(1.0 / deg)

    items_embedding = jax.random.normal(k2, (N_ITEMS, H), dtype=jnp.float32)

    # sessions: real item ids in [1, N_ITEMS], 0 = padding
    sessions_len = jax.random.randint(k3, (S,), 1, L + 1)
    ids = jax.random.randint(k4, (S, L), 1, N_ITEMS + 1)
    pos = jnp.arange(L)[None, :]
    padded_session_info = jnp.where(pos < sessions_len[:, None], ids, 0)

    ref = _reference_exact(D, A, items_embedding, padded_session_info,
                           sessions_len, NUM_LAYERS)

    fn = jax.jit(line_graph_conv, static_argnums=(5, 6))

    # Fused single-call kernel (default path).
    out_fused = jax.block_until_ready(
        fn(D, A, items_embedding, padded_session_info, sessions_len,
           NUM_LAYERS, False))
    assert out_fused.shape == (S, H)
    # bf16 MXU operands with f32 accumulation: ~2e-3 relative rounding/layer.
    assert jnp.allclose(out_fused, ref, atol=2e-2, rtol=2e-2), \
        "fused kernel mismatch vs reference"

    # Tiled per-layer fallback path (exercised here to keep it compile-clean).
    out_tiled = jax.block_until_ready(
        fn(D, A, items_embedding, padded_session_info, sessions_len,
           NUM_LAYERS, True))
    assert jnp.allclose(out_tiled, ref, atol=2e-2, rtol=2e-2), \
        "tiled kernel mismatch vs reference"

    print("KERNEL_OK")
</pallas_src>

<mosaic_0001>
module attributes {stable_mosaic.version = 11 : i64} {
  func.func @_fused_layers_kernel(%arg0: i32, %arg1: memref<8x1xf32, #tpu.memory_space<vmem>>, %arg2: memref<8x8xbf16, #tpu.memory_space<vmem>>, %arg3: memref<8x128xf32, #tpu.memory_space<vmem>>, %arg4: memref<8x128xf32, #tpu.memory_space<vmem>>, %arg5: memref<8x128xf32, #tpu.memory_space<vmem>>, %arg6: memref<8x128xf32, #tpu.memory_space<vmem>>) attributes {dimension_semantics = [#tpu.dimension_semantics<parallel>], iteration_bounds = array<i64: 1>, scalar_prefetch = 0 : i64, scratch_operands = 2 : i64, tpu.core_type = #tpu.core_type<tc>, window_params = [{pipeline_mode = #tpu.pipeline_mode<synchronous>, transform_indices = @transform_0, window_bounds = array<i64: 8, 1>}, {pipeline_mode = #tpu.pipeline_mode<synchronous>, transform_indices = @transform_1, window_bounds = array<i64: 8, 8>}, {transform_indices = @transform_2, window_bounds = array<i64: 8, 128>}, {transform_indices = @transform_3, window_bounds = array<i64: 8, 128>}]} {
    %c0 = arith.constant 0 : index
    %c0_0 = arith.constant 0 : index
    %0 = vector.load %arg3[%c0, %c0_0] : memref<8x128xf32, #tpu.memory_space<vmem>>, vector<8x128xf32>
    %c0_1 = arith.constant 0 : index
    %c0_2 = arith.constant 0 : index
    %1 = vector.load %arg5[%c0_1, %c0_2] : memref<8x128xf32, #tpu.memory_space<vmem>>, vector<8x128xf32>
    tpu.vector_store %arg5[%c0_1, %c0_2], %0 {strides = array<i32>} : memref<8x128xf32, #tpu.memory_space<vmem>>, vector<8x128xf32>,
    %c0_3 = arith.constant 0 : index
    %c0_4 = arith.constant 0 : index
    %2 = vector.load %arg3[%c0_3, %c0_4] : memref<8x128xf32, #tpu.memory_space<vmem>>, vector<8x128xf32>
    %c0_5 = arith.constant 0 : index
    %c0_6 = arith.constant 0 : index
    %3 = vector.load %arg6[%c0_5, %c0_6] : memref<8x128xf32, #tpu.memory_space<vmem>>, vector<8x128xf32>
    tpu.vector_store %arg6[%c0_5, %c0_6], %2 {strides = array<i32>} : memref<8x128xf32, #tpu.memory_space<vmem>>, vector<8x128xf32>,
    %c0_i32 = arith.constant 0 : i32
    %c0_7 = arith.constant 0 : index
    %c0_8 = arith.constant 0 : index
    %4 = vector.load %arg2[%c0_7, %c0_8] : memref<8x8xbf16, #tpu.memory_space<vmem>>, vector<8x8xbf16>
    %c0_9 = arith.constant 0 : index
    %c0_10 = arith.constant 0 : index
    %5 = vector.load %arg5[%c0_9, %c0_10] : memref<8x128xf32, #tpu.memory_space<vmem>>, vector<8x128xf32>
    %6 = arith.truncf %5 : vector<8x128xf32> to vector<8x128xbf16>
    %cst = arith.constant dense<0.000000e+00> : vector<8x128xf32>
    %7 = tpu.matmul %4, %6, %cst {dimension_numbers = #tpu.dot_dimension_numbers<[1], [0], [0], [1], [0, 0, 1, 1], [], []>} : vector<8x8xbf16>, vector<8x128xbf16>, vector<8x128xf32> -> vector<8x128xf32>
    %c0_11 = arith.constant 0 : index
    %c0_12 = arith.constant 0 : index
    %8 = vector.load %arg1[%c0_11, %c0_12] : memref<8x1xf32, #tpu.memory_space<vmem>>, vector<8x1xf32>
    %9 = vector.broadcast %8 : vector<8x1xf32> to vector<8x128xf32>
    %10 = arith.mulf %7, %9 : vector<8x128xf32>
    %c0_13 = arith.constant 0 : index
    %c0_14 = arith.constant 0 : index
    %11 = vector.load %arg5[%c0_13, %c0_14] : memref<8x128xf32, #tpu.memory_space<vmem>>, vector<8x128xf32>
    tpu.vector_store %arg5[%c0_13, %c0_14], %10 {strides = array<i32>} : memref<8x128xf32, #tpu.memory_space<vmem>>, vector<8x128xf32>,
    %c0_15 = arith.constant 0 : index
    %c0_16 = arith.constant 0 : index
    %12 = vector.load %arg6[%c0_15, %c0_16] : memref<8x128xf32, #tpu.memory_space<vmem>>, vector<8x128xf32>
    %13 = arith.addf %12, %10 : vector<8x128xf32>
    %c0_17 = arith.constant 0 : index
    %c0_18 = arith.constant 0 : index
    %14 = vector.load %arg6[%c0_17, %c0_18] : memref<8x128xf32, #tpu.memory_space<vmem>>, vector<8x128xf32>
    tpu.vector_store %arg6[%c0_17, %c0_18], %13 {strides = array<i32>} : memref<8x128xf32, #tpu.memory_space<vmem>>, vector<8x128xf32>,
    %c1_i32 = arith.constant 1 : i32
    %c0_19 = arith.constant 0 : index
    %c0_20 = arith.constant 0 : index
    %15 = vector.load %arg2[%c0_19, %c0_20] : memref<8x8xbf16, #tpu.memory_space<vmem>>, vector<8x8xbf16>
    %c0_21 = arith.constant 0 : index
    %c0_22 = arith.constant 0 : index
    %16 = vector.load %arg5[%c0_21, %c0_22] : memref<8x128xf32, #tpu.memory_space<vmem>>, vector<8x128xf32>
    %17 = arith.truncf %16 : vector<8x128xf32> to vector<8x128xbf16>
    %cst_23 = arith.constant dense<0.000000e+00> : vector<8x128xf32>
    %18 = tpu.matmul %15, %17, %cst_23 {dimension_numbers = #tpu.dot_dimension_numbers<[1], [0], [0], [1], [0, 0, 1, 1], [], []>} : vector<8x8xbf16>, vector<8x128xbf16>, vector<8x128xf32> -> vector<8x128xf32>
    %c0_24 = arith.constant 0 : index
    %c0_25 = arith.constant 0 : index
    %19 = vector.load %arg1[%c0_24, %c0_25] : memref<8x1xf32, #tpu.memory_space<vmem>>, vector<8x1xf32>
    %20 = vector.broadcast %19 : vector<8x1xf32> to vector<8x128xf32>
    %21 = arith.mulf %18, %20 : vector<8x128xf32>
    %c0_26 = arith.constant 0 : index
    %c0_27 = arith.constant 0 : index
    %22 = vector.load %arg5[%c0_26, %c0_27] : memref<8x128xf32, #tpu.memory_space<vmem>>, vector<8x128xf32>
    tpu.vector_store %arg5[%c0_26, %c0_27], %21 {strides = array<i32>} : memref<8x128xf32, #tpu.memory_space<vmem>>, vector<8x128xf32>,
    %c0_28 = arith.constant 0 : index
    %c0_29 = arith.constant 0 : index
    %23 = vector.load %arg6[%c0_28, %c0_29] : memref<8x128xf32, #tpu.memory_space<vmem>>, vector<8x128xf32>
    %24 = arith.addf %23, %21 : vector<8x128xf32>
    %c0_30 = arith.constant 0 : index
    %c0_31 = arith.constant 0 : index
    %25 = vector.load %arg6[%c0_30, %c0_31] : memref<8x128xf32, #tpu.memory_space<vmem>>, vector<8x128xf32>
    tpu.vector_store %arg6[%c0_30, %c0_31], %24 {strides = array<i32>} : memref<8x128xf32, #tpu.memory_space<vmem>>, vector<8x128xf32>,
    %c0_32 = arith.constant 0 : index
    %c0_33 = arith.constant 0 : index
    %26 = vector.load %arg6[%c0_32, %c0_33] : memref<8x128xf32, #tpu.memory_space<vmem>>, vector<8x128xf32>
    %cst_34 = arith.constant 0.333333343 : f32
    %27 = vector.broadcast %cst_34 : f32 to vector<8x128xf32>
    %28 = arith.mulf %26, %27 : vector<8x128xf32>
    %c0_35 = arith.constant 0 : index
    %c0_36 = arith.constant 0 : index
    %29 = vector.load %arg4[%c0_35, %c0_36] : memref<8x128xf32, #tpu.memory_space<vmem>>, vector<8x128xf32>
    tpu.vector_store %arg4[%c0_35, %c0_36], %28 {strides = array<i32>} : memref<8x128xf32, #tpu.memory_space<vmem>>, vector<8x128xf32>,
    return
  }
  func.func @transform_0(%arg0: i32) -> (i32, i32) {
    %c0_i32 = arith.constant 0 : i32
    %c0_i32_0 = arith.constant 0 : i32
    %c0_i32_1 = arith.constant 0 : i32
    return %c0_i32, %c0_i32_0 : i32, i32
  }
  func.func @transform_1(%arg0: i32) -> (i32, i32) {
    %c0_i32 = arith.constant 0 : i32
    %c0_i32_0 = arith.constant 0 : i32
    %c0_i32_1 = arith.constant 0 : i32
    return %c0_i32, %c0_i32_0 : i32, i32
  }
  func.func @transform_2(%arg0: i32) -> (i32, i32) {
    %c0_i32 = arith.constant 0 : i32
    %c0_i32_0 = arith.constant 0 : i32
    return %c0_i32, %arg0 : i32, i32
  }
  func.func @transform_3(%arg0: i32) -> (i32, i32) {
    %c0_i32 = arith.constant 0 : i32
    %c0_i32_0 = arith.constant 0 : i32
    return %c0_i32, %arg0 : i32, i32
  }
}

</mosaic_0001>

<bundles_post_ra>
// kernel: line_graph_conv.1
= control target key start
LH: loop header
LB: loop body
LE: loop exit
PB: predicated region body
PF: predicated region fallthrough
CT: control target
= control target key end

     0   :  { %vm27_vm0 = vcmask 1043456   ;;  %v206_v1 = vmov 0.0   ;;  %vm207_vm1 = vmmov 0   ;;  %s256_s0 = inlined_call_operand.vmem [shape: f32[8,1], index: 0, kind: input, shape index: {}]   ;;  %s257_s1 = inlined_call_operand.vmem [shape: bf16[8,8], index: 1, kind: input, shape index: {}]   ;;  %s258_s2 = inlined_call_operand.vmem [shape: f32[8,128], index: 2, kind: input, shape index: {}]   ;;  %s259_s3 = inlined_call_operand.hbm [shape: f32[8,128], index: 3, kind: output, shape index: {}]  }
   0x1   :  { %v16_v0 = vld [vmem:[%s258_s2] sm:$0xff]  ;;  %165 = vmatprep.subr.bf16.mxu0 %v206_v1  ;;  %167 = vmatprep.mubr.msk.bf16.mxu0 %vm207_vm1, %v206_v1 }
   0x2   :  { %v22_v2 = vpack.c.bf16 %v16_v0, %v16_v0  ;;  %v71_v3 = vld [vmem:[%s256_s0] sm:$0xff] }
   0x3   :  { %8 = vsyncpa [#allocation5], 0  ;;  %v208_v4 = vmov 0   ;;  %171 = vmatprep.subr.bf16.mxu1 %v206_v1  ;;  %173 = vmatprep.mubr.msk.bf16.mxu1 %vm207_vm1, %v206_v1  ;;  %v20_v6 = vld [vmem:[%s257_s1] sm:$0xf]  ;;  %vm23_vm2 = vcmask 64512  }
   0x4   :  { %181 = vset.pattern.permute.xlu0 %v208_v4  ;;  %v29_v5 = vsel %vm27_vm0, %v22_v2, 0  ;;  %v82_v15 = vld [vmem:[%s257_s1] sm:$0xf]  ;;  %s209_s18 = smov [#allocation4]  }
   0x5   :  { %74 = vperm.xlu0 %181, %v71_v3   ;;  %166 = vmatpush3.bf16.msra.mxu0 %v29_v5  ;;  %s151_s19 = sshll.u32 %s209_s18, 4  ;;  %s152_s19 = int_to_ptr.vmem [resolvable:$true] %s151_s19 }
   0x6   :  { %s182_s20 = scalar_lea.vmem %s152_s19, 128  ;;  %p187_p1 = scmp.lt.s32.totalorder %s152_s19, %s152_s19 }
   0x7   :  { %p183_p0 = scmp.ne.s32.totalorder %s152_s19, %s182_s20  ;;  %p188_p2 = scmp.lt.s32.totalorder %s182_s20, %s182_s20 }
   0x8   :  { %168 = vmatmul.mubr.msk.bf16.vlgmr.msra.gmra.mrb[0].mxu0 %vm23_vm2, %v20_v6 }
   0x9   :  { %134 = vperm.xlu0 %181, %v71_v3   ;;  %p189_p3 = por %p188_p2, %p187_p1 }
   0xb   :  { %p190_p4 = pnand %p189_p3, %p183_p0 }
  0x84   :  { %v75_v7 = vpop.permute.xlu0 %74 }
  0x88   :  { %v135_v16 = vpop.permute.xlu0 %134 }
  0xdb   :  { %v65_v8 = vpop.f32.mrb[0].mxu0 }
  0xdc   :  { %v77_v9 = vmul.f32 %v75_v7, %v65_v8  ;;  %v169_v10 = vpop.f32.mrb[1].mxu0 }
  0xdd   :  { %v68_v11 = vpop.f32.mrb[2].mxu0 }
  0xde   :  { %v170_v12 = vpop.f32.mrb[3].mxu0  ;;  %v84_v13 = vpack.c.bf16 %v77_v9, %v77_v9  ;;  %v80_v18 = vadd.f32 %v77_v9, %v16_v0 }
  0xe0   :  { %v89_v14 = vsel %vm27_vm0, %v84_v13, 0 }
  0xe1   :  { %172 = vmatpush3.bf16.msra.mxu1 %v89_v14 }
  0xe4   :  { %174 = vmatmul.mubr.msk.bf16.vlgmr.msra.gmra.mrb[0].mxu1 %vm23_vm2, %v82_v15 }
 0x1b7   :  { %v125_v17 = vpop.f32.mrb[0].mxu1 }
 0x1b8   :  { %v137_v19 = vmul.f32 %v135_v16, %v125_v17  ;;  %v175_v20 = vpop.f32.mrb[1].mxu1 }
 0x1b9   :  { %v128_v21 = vpop.f32.mrb[2].mxu1 }
 0x1ba   :  { %v140_v22 = vadd.f32 %v137_v19, %v80_v18  ;;  %v176_v23 = vpop.f32.mrb[3].mxu1 }
 0x1bc   :  { %v143_v24 = vmul.f32 0.33333334, %v140_v22 }
 0x1be   :  { %144 = vst [vmem:[#allocation4] sm:$0xff] %v143_v24 }
 0x1bf   :  { %193 = shalt.err (!%p190_p4)
}
 0x1c0   :  { %s194_s22 = scalar_lea.hbm %s259_s3, 128 }
 0x1c1   :  { %p195_p5 = scmp.ne.s32.totalorder %s259_s3, %s194_s22  ;;  %p198_p6 = scmp.lt.u32.totalorder %s194_s22, %s259_s3 }
 0x1c3   :  { %p200_p7 = pnand %p198_p6, %p195_p5 }
 0x1c5   :  { %203 = shalt.err (!%p200_p7)
}
 0x1c6   :  { %154 = dma.vmem_to_hbm [thread:$0]  %s152_s19, 128, %s259_s3, [#allocation5]  }
 0x1c7   :  { %204 = dma.done.wait [#allocation5], 128  }
 0x1c8   :  { %205 = vsyncadd [#allocation5], 4294967168 }
 0x1c9   :  { %158 = vsyncpa [#allocation5], 1 }

</bundles_post_ra>
